<compile_context>
chip_gen: v6e
topology: v6e:2x2x1
jax: 0.10.0
libtpu: 0.0.40
codegen_flags: <defaults>
</compile_context>

<pallas_src>
import functools

import numpy as np

import jax
import jax.numpy as jnp
from jax import lax
from jax.experimental import pallas as pl
from jax.experimental.pallas import tpu as pltpu

EPS = 1e-5


# ----------------------------------------------------------------------------
# In-kernel tap shifts on a folded (C, nb*L) slab.
#   shift_right: value at lane j-1, zero at sample starts
#   shift_left : value at lane j+1, zero at sample ends
# `not_first` / `not_last` are precomputed 0/1 masks of shape (1, nb*L).
# ----------------------------------------------------------------------------
def _shift_right(a, not_first, use_roll):
    if use_roll:
        s = pltpu.roll(a, shift=1, axis=1)            # out[j] = a[j-1] (wraps)
    else:
        s = jnp.concatenate([jnp.zeros_like(a[:, :1]), a[:, :-1]], axis=1)
    return s * not_first


def _shift_left(a, not_last, use_roll):
    if use_roll:
        s = pltpu.roll(a, shift=a.shape[-1] - 1, axis=1)   # out[j] = a[j+1]
    else:
        s = jnp.concatenate([a[:, 1:], jnp.zeros_like(a[:, :1])], axis=1)
    return s * not_last


# ----------------------------------------------------------------------------
# Pass 1: conv1 (k=3, pad=1, stride) as one MXU matmul + per-tile BN1 partials.
# ----------------------------------------------------------------------------
def _make_conv1_kernel(stride, use_roll):
    def kernel(*refs):
        phase_refs = refs[:stride]
        nf_ref, nl_ref, w_ref = refs[stride:stride + 3]
        y_ref, st_ref = refs[stride + 3:]

        nf = nf_ref[...]                      # (1, T)  0 at sample starts
        nl = nl_ref[...]                      # (1, T)  0 at sample ends
        p0 = phase_refs[0][0]                 # (Cin, T), tap k=1

        tap1 = p0
        tap2 = (phase_refs[1][0] if stride > 1
                else _shift_left(p0, nl, use_roll))
        tap0 = _shift_right(phase_refs[stride - 1][0], nf, use_roll)

        m = jnp.concatenate([tap0, tap1, tap2], axis=0)        # (3*Cin, T)
        y = jnp.dot(w_ref[...], m, preferred_element_type=jnp.float32)
        y_ref[0] = y
        st_ref[0] = jnp.concatenate(
            [jnp.sum(y, axis=1, keepdims=True),
             jnp.sum(y * y, axis=1, keepdims=True)], axis=1)   # (C1, 2)
    return kernel


# ----------------------------------------------------------------------------
# Pass 2: bn1-apply + ReLU + conv2 (k=3, pad=1, stride=1) + per-tile BN2 partials.
# ----------------------------------------------------------------------------
def _make_conv2_kernel(use_roll, mxu_dtype):
    def kernel(y1_ref, sc_ref, sh_ref, nf_ref, nl_ref, w_ref, y2_ref, st_ref):
        nf = nf_ref[...]
        nl = nl_ref[...]
        h = jnp.maximum(y1_ref[0] * sc_ref[...] + sh_ref[...], 0.0)   # f32
        hm = h.astype(mxu_dtype)                                      # one cast
        m = jnp.concatenate([_shift_right(hm, nf, use_roll), hm,
                             _shift_left(hm, nl, use_roll)], axis=0)  # (3*C1, T)
        y2 = jnp.dot(w_ref[...], m, preferred_element_type=jnp.float32)
        y2_ref[0] = y2
        st_ref[0] = jnp.concatenate(
            [jnp.sum(y2, axis=1, keepdims=True),
             jnp.sum(y2 * y2, axis=1, keepdims=True)], axis=1)
    return kernel


# ----------------------------------------------------------------------------
# Pass 3: bn2-apply + skip (identity or 1x1 conv) + ReLU.
# ----------------------------------------------------------------------------
def _make_output_kernel(use_1conv):
    def kernel(*refs):
        if use_1conv:
            y2_ref, sc_ref, sh_ref, x0_ref, w3_ref, b3_ref, out_ref = refs
            xs = jnp.dot(w3_ref[...], x0_ref[0],
                         preferred_element_type=jnp.float32) + b3_ref[...]
        else:
            y2_ref, sc_ref, sh_ref, x0_ref, out_ref = refs
            xs = x0_ref[0].astype(jnp.float32)
        out_ref[0] = jnp.maximum(y2_ref[0] * sc_ref[...] + sh_ref[...] + xs, 0.0)
    return kernel


# ----------------------------------------------------------------------------
# Wrapper-side layout plumbing / helpers.
# ----------------------------------------------------------------------------
def _fold(a, nb):
    # (N, C, L) -> (N//nb, C, nb*L): nb whole samples per tile, lane-dense.
    n, c, l = a.shape
    return a.reshape(n // nb, nb, c, l).transpose(0, 2, 1, 3).reshape(n // nb, c, nb * l)


def _unfold(a, nb):
    # (nt, C, nb*L) -> (nt*nb, C, L)
    nt, c, t = a.shape
    l = t // nb
    return a.reshape(nt, c, nb, l).transpose(0, 2, 1, 3).reshape(nt * nb, c, l)


def _bn_scale_shift(stats, gamma, beta, count):
    # stats: (num_tiles, C, 2) partial (sum, sumsq); tiny cross-tile reduce in XLA.
    tot = jnp.sum(stats, axis=0)                               # (C, 2)
    mean = tot[:, 0] / count
    var = jnp.maximum(tot[:, 1] / count - mean * mean, 0.0)    # clamp: cancellation
    scale = gamma.astype(jnp.float32) * lax.rsqrt(var + EPS)
    shift = beta.astype(jnp.float32) - mean * scale            # mean folded in
    return scale.reshape(-1, 1), shift.reshape(-1, 1)


def _vmem_limit(blocks):
    # blocks: list of (block_shape, dtype). Double-buffered + 2x headroom.
    need = 0
    for shp, dt in blocks:
        need += int(np.prod(shp)) * jnp.dtype(dt).itemsize
    need = 4 * need + (1 << 20)
    return int(min(max(need, 4 << 20), 48 << 20))   # <= 48 MiB: safe on v7x (64 MiB)


# ----------------------------------------------------------------------------
# Forward pass.
# ----------------------------------------------------------------------------
@functools.partial(jax.jit,
                   static_argnames=("use_1conv", "stride", "mxu_dtype", "max_lanes"))
def residual_forward(x, params, use_1conv=False, stride=1,
                     mxu_dtype=jnp.float32, max_lanes=2048):
    N, Cin, L = x.shape
    C1 = params["w1"].shape[0]
    L1 = (L + 2 - 3) // stride + 1
    NL = N * L1
    f32 = jnp.float32

    if not use_1conv:
        assert Cin == C1 and stride == 1, \
            "use_1conv=False requires input_channels == num_channels and stride == 1"

    # Batch-tile selection: nb whole samples per tile, nb | N.  At production
    # shapes choose max_lanes so nb*L1 is a multiple of 128 (unmasked stores)
    # and the tile fits the per-generation VMEM budget (<=1024 f32 lanes on v7x
    # at large channel counts).
    nb = max(1, min(N, max_lanes // max(L1, 1)))
    while N % nb:
        nb -= 1
    nt = N // nb
    T = nb * L1
    use_roll = (T % 128 == 0)   # pltpu.roll on aligned lane widths, concat otherwise

    # --- layout plumbing (outside the kernels) --------------------------------
    xt = x.astype(f32)
    if stride > 1:
        pad = L1 * stride - L
        if pad > 0:
            xt = jnp.pad(xt, ((0, 0), (0, 0), (0, pad)))
    # Phase p holds x[..., l*stride + p]; stride == 1 -> just x. Cast to the MXU
    # dtype in the wrapper (bf16 halves HBM traffic + im2col VMEM footprint).
    phases = [_fold(xt[:, :, p::stride], nb).astype(mxu_dtype) for p in range(stride)]

    # Sample-boundary masks, precomputed once (constant index_map -> resident).
    col = np.arange(T) % L1
    not_first = jnp.asarray(col != 0, dtype=mxu_dtype).reshape(1, T)
    not_last = jnp.asarray(col != L1 - 1, dtype=mxu_dtype).reshape(1, T)

    # im2col weight layout: w1r[o, k*Cin + c] = w1[o, c, k]
    w1r = jnp.transpose(params["w1"], (0, 2, 1)).reshape(C1, 3 * Cin).astype(mxu_dtype)
    w2r = jnp.transpose(params["w2"], (0, 2, 1)).reshape(C1, 3 * C1).astype(mxu_dtype)

    slab_in = lambda C: pl.BlockSpec((1, C, T), lambda i: (i, 0, 0))
    slab_out = lambda C: pl.BlockSpec((1, C, T), lambda i: (i, 0, 0))
    stat_out = pl.BlockSpec((1, C1, 2), lambda i: (i, 0, 0))
    resident = lambda shape: pl.BlockSpec(shape, lambda i: (0,) * len(shape))

    def cparams(blocks):
        return pltpu.CompilerParams(dimension_semantics=("parallel",),
                                    vmem_limit_bytes=_vmem_limit(blocks))

    # --- pass 1: conv1 + partial BN1 stats -------------------------------------
    blocksA = [((1, Cin, T), mxu_dtype)] * stride + [((1, C1, T), f32)]
    y1, st1 = pl.pallas_call(
        _make_conv1_kernel(stride, use_roll),
        grid_spec=pltpu.PrefetchScalarGridSpec(
            num_scalar_prefetch=0, grid=(nt,),
            in_specs=[slab_in(Cin)] * stride
                     + [resident((1, T)), resident((1, T)),
                        resident((C1, 3 * Cin))],
            out_specs=(slab_out(C1), stat_out)),
        out_shape=(jax.ShapeDtypeStruct((nt, C1, T), f32),
                   jax.ShapeDtypeStruct((nt, C1, 2), f32)),
        compiler_params=cparams(blocksA),
    )(*phases, not_first, not_last, w1r)

    scale1, shift1 = _bn_scale_shift(st1, params["g1"], params["be1"], NL)

    # --- pass 2: bn1 + relu + conv2 + partial BN2 stats -------------------------
    blocksB = [((1, C1, T), f32), ((1, C1, T), f32)]
    y2, st2 = pl.pallas_call(
        _make_conv2_kernel(use_roll, mxu_dtype),
        grid_spec=pltpu.PrefetchScalarGridSpec(
            num_scalar_prefetch=0, grid=(nt,),
            in_specs=[slab_in(C1), resident((C1, 1)), resident((C1, 1)),
                      resident((1, T)), resident((1, T)),
                      resident((C1, 3 * C1))],
            out_specs=(slab_out(C1), stat_out)),
        out_shape=(jax.ShapeDtypeStruct((nt, C1, T), f32),
                   jax.ShapeDtypeStruct((nt, C1, 2), f32)),
        compiler_params=cparams(blocksB),
    )(y1, scale1, shift1, not_first, not_last, w2r)

    scale2, shift2 = _bn_scale_shift(st2, params["g2"], params["be2"], NL)

    # --- pass 3: bn2 + skip + relu ----------------------------------------------
    args = [y2, scale2, shift2, phases[0]]
    in_specs = [slab_in(C1), resident((C1, 1)), resident((C1, 1)), slab_in(Cin)]
    if use_1conv:
        args += [params["w3"].reshape(C1, Cin).astype(mxu_dtype),
                 params["b3"].reshape(C1, 1).astype(f32)]
        in_specs += [resident((C1, Cin)), resident((C1, 1))]
    blocksC = [((1, C1, T), f32), ((1, Cin, T), mxu_dtype), ((1, C1, T), f32)]
    out = pl.pallas_call(
        _make_output_kernel(use_1conv),
        grid_spec=pltpu.PrefetchScalarGridSpec(
            num_scalar_prefetch=0, grid=(nt,),
            in_specs=in_specs,
            out_specs=slab_out(C1)),
        out_shape=jax.ShapeDtypeStruct((nt, C1, T), f32),
        compiler_params=cparams(blocksC),
    )(*args)

    return _unfold(out, nb)     # (N, C1, L1)


# ----------------------------------------------------------------------------
# Pure-JAX reference (PyTorch-faithful, training-mode BN) for verification.
# ----------------------------------------------------------------------------
def _conv1d_ref(x, w, b, stride, padding):
    y = lax.conv_general_dilated(
        x, w, window_strides=(stride,), padding=[(padding, padding)],
        dimension_numbers=("NCH", "OIH", "NCH"))
    return y + b[None, :, None]


def _bn_train_ref(y, gamma, beta):
    m = y.mean(axis=(0, 2), keepdims=True)
    v = ((y - m) ** 2).mean(axis=(0, 2), keepdims=True)
    return gamma[None, :, None] * (y - m) / jnp.sqrt(v + EPS) + beta[None, :, None]


def residual_ref(x, p, use_1conv=False, stride=1):
    y = _conv1d_ref(x, p["w1"], p["b1"], stride, 1)
    y = jax.nn.relu(_bn_train_ref(y, p["g1"], p["be1"]))
    y = _bn_train_ref(_conv1d_ref(y, p["w2"], p["b2"], 1, 1), p["g2"], p["be2"])
    xs = _conv1d_ref(x, p["w3"], p["b3"], stride, 0) if use_1conv else x
    return jax.nn.relu(y + xs)


def init_params(key, input_channels, num_channels, use_1conv):
    ks = jax.random.split(key, 6)
    p = {
        "w1": 0.1 * jax.random.normal(ks[0], (num_channels, input_channels, 3), jnp.float32),
        "b1": 0.1 * jax.random.normal(ks[1], (num_channels,), jnp.float32),
        "w2": 0.1 * jax.random.normal(ks[2], (num_channels, num_channels, 3), jnp.float32),
        "b2": 0.1 * jax.random.normal(ks[3], (num_channels,), jnp.float32),
        "g1": jnp.ones((num_channels,), jnp.float32),
        "be1": jnp.zeros((num_channels,), jnp.float32),
        "g2": jnp.ones((num_channels,), jnp.float32),
        "be2": jnp.zeros((num_channels,), jnp.float32),
    }
    if use_1conv:
        p["w3"] = 0.1 * jax.random.normal(ks[4], (num_channels, input_channels, 1), jnp.float32)
        p["b3"] = 0.1 * jax.random.normal(ks[5], (num_channels,), jnp.float32)
    return p


# ----------------------------------------------------------------------------
if __name__ == "__main__":
    key = jax.random.PRNGKey(0)
    kx, kp1, kp2, kp3, kp4, kx2, kx3 = jax.random.split(key, 7)

    # Config A: identity skip, tiny shapes, forced 2-tile grid (max_lanes=16).
    N, Cin, L = 2, 4, 16
    xA = jax.random.normal(kx, (N, Cin, L), jnp.float32)
    pA = init_params(kp1, Cin, Cin, use_1conv=False)
    outA = residual_forward(xA, pA, use_1conv=False, stride=1, max_lanes=16)
    refA = residual_ref(xA, pA, use_1conv=False, stride=1)

    # Config B: projection (1x1) skip.
    pB = init_params(kp2, Cin, 8, use_1conv=True)
    outB = residual_forward(xA, pB, use_1conv=True, stride=1)
    refB = residual_ref(xA, pB, use_1conv=True, stride=1)

    # Config C: bf16 MXU operand path (BN stats / elementwise stay f32).
    outC = residual_forward(xA, pB, use_1conv=True, stride=1, mxu_dtype=jnp.bfloat16)

    # Config D: lane-aligned tiles (T = 256 -> pltpu.roll path), grid of 2 tiles.
    xD = jax.random.normal(kx2, (4, 8, 128), jnp.float32)
    pD = init_params(kp3, 8, 16, use_1conv=True)
    outD = residual_forward(xD, pD, use_1conv=True, stride=1, max_lanes=256)
    refD = residual_ref(xD, pD, use_1conv=True, stride=1)

    # Config E: stride-2 projection block (phase decomposition path).
    xE = jax.random.normal(kx3, (2, 4, 32), jnp.float32)
    pE = init_params(kp4, 4, 8, use_1conv=True)
    outE = residual_forward(xE, pE, use_1conv=True, stride=2)
    refE = residual_ref(xE, pE, use_1conv=True, stride=2)

    jax.block_until_ready((outA, outB, outC, outD, outE))

    assert outA.shape == (2, 4, 16) and outB.shape == (2, 8, 16)
    assert outD.shape == (4, 16, 128) and outE.shape == (2, 8, 16)
    assert jnp.allclose(outA, refA, atol=1e-3, rtol=1e-3), "config A mismatch"
    assert jnp.allclose(outB, refB, atol=1e-3, rtol=1e-3), "config B mismatch"
    assert jnp.allclose(outC, refB, atol=5e-2, rtol=5e-2), "config C (bf16 MXU) mismatch"
    assert jnp.allclose(outD, refD, atol=1e-3, rtol=1e-3), "config D mismatch"
    assert jnp.allclose(outE, refE, atol=1e-3, rtol=1e-3), "config E mismatch"

    print("KERNEL_OK")
</pallas_src>

<mosaic_0001>
module attributes {stable_mosaic.version = 11 : i64} {
  func.func @kernel(%arg0: i32, %arg1: memref<1x4x16xf32, #tpu.memory_space<vmem>>, %arg2: memref<1x16xf32, #tpu.memory_space<vmem>>, %arg3: memref<1x16xf32, #tpu.memory_space<vmem>>, %arg4: memref<4x12xf32, #tpu.memory_space<vmem>>, %arg5: memref<1x4x16xf32, #tpu.memory_space<vmem>>, %arg6: memref<1x4x2xf32, #tpu.memory_space<vmem>>) attributes {dimension_semantics = [#tpu.dimension_semantics<parallel>], iteration_bounds = array<i64: 2>, scalar_prefetch = 0 : i64, scratch_operands = 0 : i64, tpu.core_type = #tpu.core_type<tc>, window_params = [{transform_indices = @transform_0, window_bounds = array<i64: 1, 4, 16>}, {pipeline_mode = #tpu.pipeline_mode<synchronous>, transform_indices = @transform_1, window_bounds = array<i64: 1, 16>}, {pipeline_mode = #tpu.pipeline_mode<synchronous>, transform_indices = @transform_2, window_bounds = array<i64: 1, 16>}, {pipeline_mode = #tpu.pipeline_mode<synchronous>, transform_indices = @transform_3, window_bounds = array<i64: 4, 12>}, {transform_indices = @transform_4, window_bounds = array<i64: 1, 4, 16>}, {transform_indices = @transform_5, window_bounds = array<i64: 1, 4, 2>}]} {
    %c0 = arith.constant 0 : index
    %c0_0 = arith.constant 0 : index
    %0 = vector.load %arg2[%c0, %c0_0] : memref<1x16xf32, #tpu.memory_space<vmem>>, vector<1x16xf32>
    %c0_1 = arith.constant 0 : index
    %c0_2 = arith.constant 0 : index
    %1 = vector.load %arg3[%c0_1, %c0_2] : memref<1x16xf32, #tpu.memory_space<vmem>>, vector<1x16xf32>
    %c0_3 = arith.constant 0 : index
    %c0_4 = arith.constant 0 : index
    %c0_5 = arith.constant 0 : index
    %2 = vector.load %arg1[%c0_3, %c0_4, %c0_5] : memref<1x4x16xf32, #tpu.memory_space<vmem>>, vector<1x4x16xf32>
    %3 = vector.shape_cast %2 : vector<1x4x16xf32> to vector<4x16xf32>
    %4 = vector.extract_strided_slice %3 {offsets = [0, 1], sizes = [4, 15], strides = [1, 1]} : vector<4x16xf32> to vector<4x15xf32>
    %cst = arith.constant 0.000000e+00 : f32
    %5 = vector.broadcast %cst : f32 to vector<4x1xf32>
    %6 = tpu.concatenate %4, %5 in 1 : vector<4x15xf32>, vector<4x1xf32> -> vector<4x16xf32>
    %7 = vector.broadcast %1 : vector<1x16xf32> to vector<4x16xf32>
    %8 = arith.mulf %6, %7 : vector<4x16xf32>
    %c0_6 = arith.constant 0 : index
    %c0_7 = arith.constant 0 : index
    %c0_8 = arith.constant 0 : index
    %9 = vector.load %arg1[%c0_6, %c0_7, %c0_8] : memref<1x4x16xf32, #tpu.memory_space<vmem>>, vector<1x4x16xf32>
    %10 = vector.shape_cast %9 : vector<1x4x16xf32> to vector<4x16xf32>
    %cst_9 = arith.constant 0.000000e+00 : f32
    %11 = vector.broadcast %cst_9 : f32 to vector<4x1xf32>
    %12 = vector.extract_strided_slice %10 {offsets = [0, 0], sizes = [4, 15], strides = [1, 1]} : vector<4x16xf32> to vector<4x15xf32>
    %13 = tpu.concatenate %11, %12 in 1 : vector<4x1xf32>, vector<4x15xf32> -> vector<4x16xf32>
    %14 = vector.broadcast %0 : vector<1x16xf32> to vector<4x16xf32>
    %15 = arith.mulf %13, %14 : vector<4x16xf32>
    %16 = tpu.concatenate %15, %3, %8 in 0 : vector<4x16xf32>, vector<4x16xf32>, vector<4x16xf32> -> vector<12x16xf32>
    %c0_10 = arith.constant 0 : index
    %c0_11 = arith.constant 0 : index
    %17 = vector.load %arg4[%c0_10, %c0_11] : memref<4x12xf32, #tpu.memory_space<vmem>>, vector<4x12xf32>
    %cst_12 = arith.constant dense<0.000000e+00> : vector<4x16xf32>
    %18 = tpu.matmul %17, %16, %cst_12 {dimension_numbers = #tpu.dot_dimension_numbers<[1], [0], [0], [1], [0, 0, 1, 1], [], []>} : vector<4x12xf32>, vector<12x16xf32>, vector<4x16xf32> -> vector<4x16xf32>
    %c0_13 = arith.constant 0 : index
    %c0_14 = arith.constant 0 : index
    %c0_15 = arith.constant 0 : index
    %19 = vector.load %arg5[%c0_13, %c0_14, %c0_15] : memref<1x4x16xf32, #tpu.memory_space<vmem>>, vector<1x4x16xf32>
    %20 = vector.shape_cast %19 : vector<1x4x16xf32> to vector<4x16xf32>
    %21 = vector.shape_cast %18 : vector<4x16xf32> to vector<1x4x16xf32>
    tpu.vector_store %arg5[%c0_13, %c0_14, %c0_15], %21 {strides = array<i32>} : memref<1x4x16xf32, #tpu.memory_space<vmem>>, vector<1x4x16xf32>,
    %cst_16 = arith.constant dense<0.000000e+00> : vector<4xf32>
    %22 = vector.multi_reduction <add>, %18, %cst_16 [1] : vector<4x16xf32> to vector<4xf32>
    %23 = vector.shape_cast %22 : vector<4xf32> to vector<4x1xf32>
    %24 = arith.mulf %18, %18 : vector<4x16xf32>
    %cst_17 = arith.constant dense<0.000000e+00> : vector<4xf32>
    %25 = vector.multi_reduction <add>, %24, %cst_17 [1] : vector<4x16xf32> to vector<4xf32>
    %26 = vector.shape_cast %25 : vector<4xf32> to vector<4x1xf32>
    %27 = tpu.concatenate %23, %26 in 1 : vector<4x1xf32>, vector<4x1xf32> -> vector<4x2xf32>
    %c0_18 = arith.constant 0 : index
    %c0_19 = arith.constant 0 : index
    %c0_20 = arith.constant 0 : index
    %28 = vector.load %arg6[%c0_18, %c0_19, %c0_20] : memref<1x4x2xf32, #tpu.memory_space<vmem>>, vector<1x4x2xf32>
    %29 = vector.shape_cast %28 : vector<1x4x2xf32> to vector<4x2xf32>
    %30 = vector.shape_cast %27 : vector<4x2xf32> to vector<1x4x2xf32>
    tpu.vector_store %arg6[%c0_18, %c0_19, %c0_20], %30 {strides = array<i32>} : memref<1x4x2xf32, #tpu.memory_space<vmem>>, vector<1x4x2xf32>,
    return
  }
  func.func @transform_0(%arg0: i32) -> (i32, i32, i32) {
    %c0_i32 = arith.constant 0 : i32
    %c0_i32_0 = arith.constant 0 : i32
    %c0_i32_1 = arith.constant 0 : i32
    return %arg0, %c0_i32, %c0_i32_0 : i32, i32, i32
  }
  func.func @transform_1(%arg0: i32) -> (i32, i32) {
    %c0_i32 = arith.constant 0 : i32
    %c0_i32_0 = arith.constant 0 : i32
    %c0_i32_1 = arith.constant 0 : i32
    return %c0_i32, %c0_i32_0 : i32, i32
  }
  func.func @transform_2(%arg0: i32) -> (i32, i32) {
    %c0_i32 = arith.constant 0 : i32
    %c0_i32_0 = arith.constant 0 : i32
    %c0_i32_1 = arith.constant 0 : i32
    return %c0_i32, %c0_i32_0 : i32, i32
  }
  func.func @transform_3(%arg0: i32) -> (i32, i32) {
    %c0_i32 = arith.constant 0 : i32
    %c0_i32_0 = arith.constant 0 : i32
    %c0_i32_1 = arith.constant 0 : i32
    return %c0_i32, %c0_i32_0 : i32, i32
  }
  func.func @transform_4(%arg0: i32) -> (i32, i32, i32) {
    %c0_i32 = arith.constant 0 : i32
    %c0_i32_0 = arith.constant 0 : i32
    %c0_i32_1 = arith.constant 0 : i32
    return %arg0, %c0_i32, %c0_i32_0 : i32, i32, i32
  }
  func.func @transform_5(%arg0: i32) -> (i32, i32, i32) {
    %c0_i32 = arith.constant 0 : i32
    %c0_i32_0 = arith.constant 0 : i32
    %c0_i32_1 = arith.constant 0 : i32
    return %arg0, %c0_i32, %c0_i32_0 : i32, i32, i32
  }
}

module attributes {stable_mosaic.version = 11 : i64} {
  func.func @kernel(%arg0: i32, %arg1: memref<1x4x16xf32, #tpu.memory_space<vmem>>, %arg2: memref<4x1xf32, #tpu.memory_space<vmem>>, %arg3: memref<4x1xf32, #tpu.memory_space<vmem>>, %arg4: memref<1x4x16xf32, #tpu.memory_space<vmem>>, %arg5: memref<1x4x16xf32, #tpu.memory_space<vmem>>) attributes {dimension_semantics = [#tpu.dimension_semantics<parallel>], iteration_bounds = array<i64: 2>, scalar_prefetch = 0 : i64, scratch_operands = 0 : i64, tpu.core_type = #tpu.core_type<tc>, window_params = [{transform_indices = @transform_0, window_bounds = array<i64: 1, 4, 16>}, {pipeline_mode = #tpu.pipeline_mode<synchronous>, transform_indices = @transform_1, window_bounds = array<i64: 4, 1>}, {pipeline_mode = #tpu.pipeline_mode<synchronous>, transform_indices = @transform_2, window_bounds = array<i64: 4, 1>}, {transform_indices = @transform_3, window_bounds = array<i64: 1, 4, 16>}, {transform_indices = @transform_4, window_bounds = array<i64: 1, 4, 16>}]} {
    %c0 = arith.constant 0 : index
    %c0_0 = arith.constant 0 : index
    %c0_1 = arith.constant 0 : index
    %0 = vector.load %arg4[%c0, %c0_0, %c0_1] : memref<1x4x16xf32, #tpu.memory_space<vmem>>, vector<1x4x16xf32>
    %1 = vector.shape_cast %0 : vector<1x4x16xf32> to vector<4x16xf32>
    %c0_2 = arith.constant 0 : index
    %c0_3 = arith.constant 0 : index
    %c0_4 = arith.constant 0 : index
    %2 = vector.load %arg1[%c0_2, %c0_3, %c0_4] : memref<1x4x16xf32, #tpu.memory_space<vmem>>, vector<1x4x16xf32>
    %3 = vector.shape_cast %2 : vector<1x4x16xf32> to vector<4x16xf32>
    %c0_5 = arith.constant 0 : index
    %c0_6 = arith.constant 0 : index
    %4 = vector.load %arg2[%c0_5, %c0_6] : memref<4x1xf32, #tpu.memory_space<vmem>>, vector<4x1xf32>
    %5 = vector.broadcast %4 : vector<4x1xf32> to vector<4x16xf32>
    %6 = arith.mulf %3, %5 : vector<4x16xf32>
    %c0_7 = arith.constant 0 : index
    %c0_8 = arith.constant 0 : index
    %7 = vector.load %arg3[%c0_7, %c0_8] : memref<4x1xf32, #tpu.memory_space<vmem>>, vector<4x1xf32>
    %8 = vector.broadcast %7 : vector<4x1xf32> to vector<4x16xf32>
    %9 = arith.addf %6, %8 : vector<4x16xf32>
    %10 = arith.addf %9, %1 : vector<4x16xf32>
    %cst = arith.constant 0.000000e+00 : f32
    %11 = vector.broadcast %cst : f32 to vector<4x16xf32>
    %12 = arith.maximumf %10, %11 : vector<4x16xf32>
    %c0_9 = arith.constant 0 : index
    %c0_10 = arith.constant 0 : index
    %c0_11 = arith.constant 0 : index
    %13 = vector.load %arg5[%c0_9, %c0_10, %c0_11] : memref<1x4x16xf32, #tpu.memory_space<vmem>>, vector<1x4x16xf32>
    %14 = vector.shape_cast %13 : vector<1x4x16xf32> to vector<4x16xf32>
    %15 = vector.shape_cast %12 : vector<4x16xf32> to vector<1x4x16xf32>
    tpu.vector_store %arg5[%c0_9, %c0_10, %c0_11], %15 {strides = array<i32>} : memref<1x4x16xf32, #tpu.memory_space<vmem>>, vector<1x4x16xf32>,
    return
  }
  func.func @transform_0(%arg0: i32) -> (i32, i32, i32) {
    %c0_i32 = arith.constant 0 : i32
    %c0_i32_0 = arith.constant 0 : i32
    %c0_i32_1 = arith.constant 0 : i32
    return %arg0, %c0_i32, %c0_i32_0 : i32, i32, i32
  }
  func.func @transform_1(%arg0: i32) -> (i32, i32) {
    %c0_i32 = arith.constant 0 : i32
    %c0_i32_0 = arith.constant 0 : i32
    %c0_i32_1 = arith.constant 0 : i32
    return %c0_i32, %c0_i32_0 : i32, i32
  }
  func.func @transform_2(%arg0: i32) -> (i32, i32) {
    %c0_i32 = arith.constant 0 : i32
    %c0_i32_0 = arith.constant 0 : i32
    %c0_i32_1 = arith.constant 0 : i32
    return %c0_i32, %c0_i32_0 : i32, i32
  }
  func.func @transform_3(%arg0: i32) -> (i32, i32, i32) {
    %c0_i32 = arith.constant 0 : i32
    %c0_i32_0 = arith.constant 0 : i32
    %c0_i32_1 = arith.constant 0 : i32
    return %arg0, %c0_i32, %c0_i32_0 : i32, i32, i32
  }
  func.func @transform_4(%arg0: i32) -> (i32, i32, i32) {
    %c0_i32 = arith.constant 0 : i32
    %c0_i32_0 = arith.constant 0 : i32
    %c0_i32_1 = arith.constant 0 : i32
    return %arg0, %c0_i32, %c0_i32_0 : i32, i32, i32
  }
}

module attributes {stable_mosaic.version = 11 : i64} {
  func.func @kernel(%arg0: i32, %arg1: memref<1x4x16xf32, #tpu.memory_space<vmem>>, %arg2: memref<4x1xf32, #tpu.memory_space<vmem>>, %arg3: memref<4x1xf32, #tpu.memory_space<vmem>>, %arg4: memref<1x16xf32, #tpu.memory_space<vmem>>, %arg5: memref<1x16xf32, #tpu.memory_space<vmem>>, %arg6: memref<4x12xf32, #tpu.memory_space<vmem>>, %arg7: memref<1x4x16xf32, #tpu.memory_space<vmem>>, %arg8: memref<1x4x2xf32, #tpu.memory_space<vmem>>) attributes {dimension_semantics = [#tpu.dimension_semantics<parallel>], iteration_bounds = array<i64: 2>, scalar_prefetch = 0 : i64, scratch_operands = 0 : i64, tpu.core_type = #tpu.core_type<tc>, window_params = [{transform_indices = @transform_0, window_bounds = array<i64: 1, 4, 16>}, {pipeline_mode = #tpu.pipeline_mode<synchronous>, transform_indices = @transform_1, window_bounds = array<i64: 4, 1>}, {pipeline_mode = #tpu.pipeline_mode<synchronous>, transform_indices = @transform_2, window_bounds = array<i64: 4, 1>}, {pipeline_mode = #tpu.pipeline_mode<synchronous>, transform_indices = @transform_3, window_bounds = array<i64: 1, 16>}, {pipeline_mode = #tpu.pipeline_mode<synchronous>, transform_indices = @transform_4, window_bounds = array<i64: 1, 16>}, {pipeline_mode = #tpu.pipeline_mode<synchronous>, transform_indices = @transform_5, window_bounds = array<i64: 4, 12>}, {transform_indices = @transform_6, window_bounds = array<i64: 1, 4, 16>}, {transform_indices = @transform_7, window_bounds = array<i64: 1, 4, 2>}]} {
    %c0 = arith.constant 0 : index
    %c0_0 = arith.constant 0 : index
    %0 = vector.load %arg4[%c0, %c0_0] : memref<1x16xf32, #tpu.memory_space<vmem>>, vector<1x16xf32>
    %c0_1 = arith.constant 0 : index
    %c0_2 = arith.constant 0 : index
    %1 = vector.load %arg5[%c0_1, %c0_2] : memref<1x16xf32, #tpu.memory_space<vmem>>, vector<1x16xf32>
    %c0_3 = arith.constant 0 : index
    %c0_4 = arith.constant 0 : index
    %c0_5 = arith.constant 0 : index
    %2 = vector.load %arg1[%c0_3, %c0_4, %c0_5] : memref<1x4x16xf32, #tpu.memory_space<vmem>>, vector<1x4x16xf32>
    %3 = vector.shape_cast %2 : vector<1x4x16xf32> to vector<4x16xf32>
    %c0_6 = arith.constant 0 : index
    %c0_7 = arith.constant 0 : index
    %4 = vector.load %arg2[%c0_6, %c0_7] : memref<4x1xf32, #tpu.memory_space<vmem>>, vector<4x1xf32>
    %5 = vector.broadcast %4 : vector<4x1xf32> to vector<4x16xf32>
    %6 = arith.mulf %3, %5 : vector<4x16xf32>
    %c0_8 = arith.constant 0 : index
    %c0_9 = arith.constant 0 : index
    %7 = vector.load %arg3[%c0_8, %c0_9] : memref<4x1xf32, #tpu.memory_space<vmem>>, vector<4x1xf32>
    %8 = vector.broadcast %7 : vector<4x1xf32> to vector<4x16xf32>
    %9 = arith.addf %6, %8 : vector<4x16xf32>
    %cst = arith.constant 0.000000e+00 : f32
    %10 = vector.broadcast %cst : f32 to vector<4x16xf32>
    %11 = arith.maximumf %9, %10 : vector<4x16xf32>
    %cst_10 = arith.constant 0.000000e+00 : f32
    %12 = vector.broadcast %cst_10 : f32 to vector<4x1xf32>
    %13 = vector.extract_strided_slice %11 {offsets = [0, 0], sizes = [4, 15], strides = [1, 1]} : vector<4x16xf32> to vector<4x15xf32>
    %14 = tpu.concatenate %12, %13 in 1 : vector<4x1xf32>, vector<4x15xf32> -> vector<4x16xf32>
    %15 = vector.broadcast %0 : vector<1x16xf32> to vector<4x16xf32>
    %16 = arith.mulf %14, %15 : vector<4x16xf32>
    %17 = vector.extract_strided_slice %11 {offsets = [0, 1], sizes = [4, 15], strides = [1, 1]} : vector<4x16xf32> to vector<4x15xf32>
    %cst_11 = arith.constant 0.000000e+00 : f32
    %18 = vector.broadcast %cst_11 : f32 to vector<4x1xf32>
    %19 = tpu.concatenate %17, %18 in 1 : vector<4x15xf32>, vector<4x1xf32> -> vector<4x16xf32>
    %20 = vector.broadcast %1 : vector<1x16xf32> to vector<4x16xf32>
    %21 = arith.mulf %19, %20 : vector<4x16xf32>
    %22 = tpu.concatenate %16, %11, %21 in 0 : vector<4x16xf32>, vector<4x16xf32>, vector<4x16xf32> -> vector<12x16xf32>
    %c0_12 = arith.constant 0 : index
    %c0_13 = arith.constant 0 : index
    %23 = vector.load %arg6[%c0_12, %c0_13] : memref<4x12xf32, #tpu.memory_space<vmem>>, vector<4x12xf32>
    %cst_14 = arith.constant dense<0.000000e+00> : vector<4x16xf32>
    %24 = tpu.matmul %23, %22, %cst_14 {dimension_numbers = #tpu.dot_dimension_numbers<[1], [0], [0], [1], [0, 0, 1, 1], [], []>} : vector<4x12xf32>, vector<12x16xf32>, vector<4x16xf32> -> vector<4x16xf32>
    %c0_15 = arith.constant 0 : index
    %c0_16 = arith.constant 0 : index
    %c0_17 = arith.constant 0 : index
    %25 = vector.load %arg7[%c0_15, %c0_16, %c0_17] : memref<1x4x16xf32, #tpu.memory_space<vmem>>, vector<1x4x16xf32>
    %26 = vector.shape_cast %25 : vector<1x4x16xf32> to vector<4x16xf32>
    %27 = vector.shape_cast %24 : vector<4x16xf32> to vector<1x4x16xf32>
    tpu.vector_store %arg7[%c0_15, %c0_16, %c0_17], %27 {strides = array<i32>} : memref<1x4x16xf32, #tpu.memory_space<vmem>>, vector<1x4x16xf32>,
    %cst_18 = arith.constant dense<0.000000e+00> : vector<4xf32>
    %28 = vector.multi_reduction <add>, %24, %cst_18 [1] : vector<4x16xf32> to vector<4xf32>
    %29 = vector.shape_cast %28 : vector<4xf32> to vector<4x1xf32>
    %30 = arith.mulf %24, %24 : vector<4x16xf32>
    %cst_19 = arith.constant dense<0.000000e+00> : vector<4xf32>
    %31 = vector.multi_reduction <add>, %30, %cst_19 [1] : vector<4x16xf32> to vector<4xf32>
    %32 = vector.shape_cast %31 : vector<4xf32> to vector<4x1xf32>
    %33 = tpu.concatenate %29, %32 in 1 : vector<4x1xf32>, vector<4x1xf32> -> vector<4x2xf32>
    %c0_20 = arith.constant 0 : index
    %c0_21 = arith.constant 0 : index
    %c0_22 = arith.constant 0 : index
    %34 = vector.load %arg8[%c0_20, %c0_21, %c0_22] : memref<1x4x2xf32, #tpu.memory_space<vmem>>, vector<1x4x2xf32>
    %35 = vector.shape_cast %34 : vector<1x4x2xf32> to vector<4x2xf32>
    %36 = vector.shape_cast %33 : vector<4x2xf32> to vector<1x4x2xf32>
    tpu.vector_store %arg8[%c0_20, %c0_21, %c0_22], %36 {strides = array<i32>} : memref<1x4x2xf32, #tpu.memory_space<vmem>>, vector<1x4x2xf32>,
    return
  }
  func.func @transform_0(%arg0: i32) -> (i32, i32, i32) {
    %c0_i32 = arith.constant 0 : i32
    %c0_i32_0 = arith.constant 0 : i32
    %c0_i32_1 = arith.constant 0 : i32
    return %arg0, %c0_i32, %c0_i32_0 : i32, i32, i32
  }
  func.func @transform_1(%arg0: i32) -> (i32, i32) {
    %c0_i32 = arith.constant 0 : i32
    %c0_i32_0 = arith.constant 0 : i32
    %c0_i32_1 = arith.constant 0 : i32
    return %c0_i32, %c0_i32_0 : i32, i32
  }
  func.func @transform_2(%arg0: i32) -> (i32, i32) {
    %c0_i32 = arith.constant 0 : i32
    %c0_i32_0 = arith.constant 0 : i32
    %c0_i32_1 = arith.constant 0 : i32
    return %c0_i32, %c0_i32_0 : i32, i32
  }
  func.func @transform_3(%arg0: i32) -> (i32, i32) {
    %c0_i32 = arith.constant 0 : i32
    %c0_i32_0 = arith.constant 0 : i32
    %c0_i32_1 = arith.constant 0 : i32
    return %c0_i32, %c0_i32_0 : i32, i32
  }
  func.func @transform_4(%arg0: i32) -> (i32, i32) {
    %c0_i32 = arith.constant 0 : i32
    %c0_i32_0 = arith.constant 0 : i32
    %c0_i32_1 = arith.constant 0 : i32
    return %c0_i32, %c0_i32_0 : i32, i32
  }
  func.func @transform_5(%arg0: i32) -> (i32, i32) {
    %c0_i32 = arith.constant 0 : i32
    %c0_i32_0 = arith.constant 0 : i32
    %c0_i32_1 = arith.constant 0 : i32
    return %c0_i32, %c0_i32_0 : i32, i32
  }
  func.func @transform_6(%arg0: i32) -> (i32, i32, i32) {
    %c0_i32 = arith.constant 0 : i32
    %c0_i32_0 = arith.constant 0 : i32
    %c0_i32_1 = arith.constant 0 : i32
    return %arg0, %c0_i32, %c0_i32_0 : i32, i32, i32
  }
  func.func @transform_7(%arg0: i32) -> (i32, i32, i32) {
    %c0_i32 = arith.constant 0 : i32
    %c0_i32_0 = arith.constant 0 : i32
    %c0_i32_1 = arith.constant 0 : i32
    return %arg0, %c0_i32, %c0_i32_0 : i32, i32, i32
  }
}

</mosaic_0001>

<bundles_post_ra>
// kernel: residual_forward.5
= control target key start
LH: loop header
LB: loop body
LE: loop exit
PB: predicated region body
PF: predicated region fallthrough
CT: control target
= control target key end

     0   :  { %9 = vsyncpa [#allocation3], 0  ;;  %s552_s0 = inlined_call_operand.vmem [shape: f32[2,4,16], index: 0, kind: input, shape index: {}]   ;;  %s553_s1 = inlined_call_operand.vmem [shape: f32[4,1], index: 1, kind: input, shape index: {}]   ;;  %s554_s2 = inlined_call_operand.vmem [shape: f32[4,1], index: 2, kind: input, shape index: {}]   ;;  %s555_s3 = inlined_call_operand.vmem [shape: f32[2,4,16], index: 3, kind: input, shape index: {}]   ;;  %s556_s4 = inlined_call_operand.hbm [shape: f32[2,4,16], index: 4, kind: output, shape index: {}]  }
   0x1   :  { %11 = vsyncpa [#allocation3 + $0x1], 0  ;;  %s456_s15 = smov 0   ;;  %s458_s16 = smov 0  }
   0x2   :  { %s460_s17 = smov 0   ;;  %s462_s18 = smov 0  }
   0x3 LB: > { %s477_s19 = sadd.s32 4294967295, %s427_s18   ;;  %s315_s20 = sadd.s32 4294967294, %s427_s18   ;;  %s427_s18 = sphi %s462_s18, %s562_s18   ;;  %s423_s17 = sphi %s460_s17, %s561_s17   ;;  %s419_s16 = sphi %s458_s16, %s560_s16   ;;  %s415_s15 = sphi %s456_s15, %s559_s15  }
   0x4   : > { %s481_s21 = sadd.s32 1, %s427_s18   ;;  %s118_s22 = sadd.s32 1, %s423_s17 }
   0x5   : > { %s115_s23 = ssub.s32 %s427_s18, %s481_s21  ;;  %p128_p0 = scmp.ne.s32.totalorder %s423_s17, %s419_s16 }
   0x6   : > { %p116_p1 = scmp.eq.s32.totalorder %s115_s23, 0  ;;  %p129_p2 = scmp.eq.s32.totalorder %s477_s19, 1 }
   0x7   : > { %p134_p3 = scmp.ne.s32.totalorder %s419_s16, %s415_s15  ;;  %p135_p4 = scmp.eq.s32.totalorder %s315_s20, 1 }
   0x8   : > { %s492_s24 = scalar_select %p116_p1, %s423_s17, %s118_s22  }
   0x9   : > { %p494_p5 = por %p129_p2, %p128_p0  ;;  %p498_p6 = por %p135_p4, %p134_p3 }
   0xa   : > { %p318_p7 = scmp.ge.s32.totalorder %s427_s18, 1  ;;  %p173_p8 = scmp.lt.s32.totalorder %s427_s18, 3 }
   0xc   : > { %p174_p9 = pnand %p318_p7, %p173_p8 }
   0xd   : > { %p202_p10 = scmp.lt.s32.totalorder (!%p174_p9), %s477_s19, 1  ;;  %s199_s10 = sand.u32 (!%p174_p9), 1, %s419_s16  }
   0xe   : > { %177 = sbr.rel (%p174_p9) target bundleno = 168 (0xa8), region = 36  ;;  %s319_s11 = sshll.u32 (!%p174_p9), %s199_s10, 2 }
   0xf   : > { %s323_s20 = sshll.u32 (!%p174_p9), %s477_s19, 6  ;;  %s201_s22 = scalar_lea.vmem (!%p174_p9), [#allocation2], %s319_s11 }
  0x10   : > { %s244_s23 = sshll.u32 (!%p174_p9), %s201_s22, 4  ;;  %s242_s29 = scalar_lea.hbm (!%p174_p9), %s556_s4, %s323_s20  ;;  %s245_s23 = int_to_ptr.vmem [resolvable:$true] %s244_s23 }
  0x11   : > { %s231_s30 = scalar_lea.sflag (!%p174_p9), [#allocation3], %s199_s10 }
  0x13   : > { %v212_v0 = vld [vmem:[%s553_s1] sm:$0xf]  ;;  %v429_v1 = vmov 0   ;;  %s203_s5 = scalar_select %p202_p10, %s477_s19, 1  ;;  %vm228_vm0 = vcmask 125952  }
  0x14   : > { %366 = vset.pattern.permute.xlu0 %v429_v1  ;;  %v219_v2 = vld [vmem:[%s554_s2] sm:$0xf] }
  0x15   : > { %215 = vperm.xlu0 %366, %v212_v0   ;;  %s320_s6 = sshll.u32 %s203_s5, 2  ;;  %s367_s5 = scalar_lea.vmem %s245_s23, 64 }
  0x16   : > { %s205_s9 = scalar_lea.vmem %s552_s0, %s320_s6  ;;  %s209_s14 = scalar_lea.vmem %s555_s3, %s320_s6 }
  0x17   : > { %v211_v4 = vld [vmem:[%s205_s9] sm:$0xf]  ;;  %p368_p11 = scmp.ne.s32.totalorder %s245_s23, %s367_s5  ;;  %s430_s6 = smov [#allocation2]  }
  0x18   : > { %v210_v7 = vld [vmem:[%s209_s14] sm:$0xf]  ;;  %s371_s7 = sshll.u32 %s430_s6, 4  ;;  %s372_s7 = int_to_ptr.vmem [resolvable:$false] %s371_s7 }
  0x19   : > { %222 = vperm.xlu0 %366, %v219_v2   ;;  %p369_p12 = pnand %p368_p11, %p494_p5  ;;  %s373_s19 = scalar_lea.vmem %s372_s7, 128 }
  0x1a   : > { %p374_p0 = scmp.lt.s32.totalorder %s245_s23, %s372_s7  ;;  %p375_p1 = scmp.lt.s32.totalorder %s373_s19, %s367_s5 }
  0x1b   : > { %p370_p13 = pneg %p369_p12 }
  0x1c   : > { %p376_p2 = por %p375_p1, %p374_p0 }
  0x1e   : > { %p377_p3 = pnand %p376_p2, %p370_p13 }
  0x90   : > { %v216_v3 = vpop.permute.xlu0 %215 }
  0x91   : > { %v218_v5 = vmul.f32 %v216_v3, %v211_v4 }
  0x94   : > { %v223_v6 = vpop.permute.xlu0 %222 }
  0x95   : > { %v225_v8 = vadd.f32 %v223_v6, %v218_v5 }
  0x97   : > { %v226_v9 = vadd.f32 %v225_v8, %v210_v7 }
  0x99   : > { %v227_v10 = vmax.f32 %v226_v9, 0.0 }
  0x9b   : > { %229 = vst.msk [vmem:[%s201_s22] sm:$0xf] %vm228_vm0, %v227_v10 }
  0x9c   : > { %380 = shalt.err (!%p377_p3)
}
  0x9d   : > { %s381_s8 = scalar_lea.hbm %s242_s29, 64  ;;  %s385_s11 = scalar_lea.hbm %s556_s4, 128 }
  0x9e   : > { %p382_p4 = scmp.ne.s32.totalorder %s242_s29, %s381_s8  ;;  %p386_p9 = scmp.lt.s32.totalorder %s242_s29, %s556_s4 }
  0x9f   : > { %p387_p10 = scmp.lt.s32.totalorder %s385_s11, %s381_s8 }
  0xa0   : > { %p383_p7 = pnand %p382_p4, %p494_p5 }
  0xa1   : > { %p388_p11 = por %p387_p10, %p386_p9 }
  0xa2   : > { %p384_p8 = pneg %p383_p7 }
  0xa4   : > { %p389_p12 = pnand %p388_p11, %p384_p8 }
  0xa6   : > { %392 = shalt.err (!%p389_p12)
}
  0xa7   : > { %326 = dma.vmem_to_hbm [thread:$0]  (%p494_p5), %s245_s23, 64, %s242_s29, %s231_s30  }
  0xa8 PF: > { %p332_p13 = scmp.ge.s32.totalorder %s427_s18, 2  ;;  %s256_s14 = sand.u32 1, %s415_s15  }
  0xa9   : > { %s257_s20 = scalar_lea.sflag [#allocation3], %s256_s14 }
  0xaa   : > { %p329_p0 = pnand %p332_p13, %p498_p6 }
  0xac   : > { %p330_p1 = pneg %p329_p0 }
  0xae   : > { %410 = dma.done.wait (%p330_p1), %s257_s20, 64  }
  0xaf   : > { %412 = vsyncadd (%p330_p1), %s257_s20, 4294967232  ;;  %p14_p2 = scmp.ge.s32.totalorder %s481_s21, 4   ;;  %s559_s15 = smov %s419_s16 }
  0xb0   : > { %s560_s16 = smov %s423_s17  ;;  %s561_s17 = smov %s492_s24 }
  0xb1   : > { %s562_s18 = smov %s481_s21  ;;  %16 = sbr.rel (!%p14_p2) target bundleno = 3 (0x3), region = 74 }
  0xb6   :  { %262 = vsyncpa [#allocation3], 1 }
  0xb7   :  { %264 = vsyncpa [#allocation3 + $0x1], 1 }

// kernel: residual_forward.3
= control target key start
LH: loop header
LB: loop body
LE: loop exit
PB: predicated region body
PF: predicated region fallthrough
CT: control target
= control target key end

     0   :  { %s515_s18 = smov 0   ;;  %s551_s0 = inlined_call_operand.vmem [shape: f32[2,4,16], index: 0, kind: input, shape index: {}]   ;;  %s552_s1 = inlined_call_operand.vmem [shape: f32[1,16], index: 1, kind: input, shape index: {}]   ;;  %s553_s2 = inlined_call_operand.vmem [shape: f32[1,16], index: 2, kind: input, shape index: {}]   ;;  %s554_s3 = inlined_call_operand.vmem [shape: f32[4,12], index: 3, kind: input, shape index: {}]   ;;  %s555_s4 = inlined_call_operand.vmem [shape: f32[2,4,16], index: 4, kind: output, shape index: {0}]   ;;  %s556_s5 = inlined_call_operand.vmem [shape: f32[2,4,2], index: 5, kind: output, shape index: {1}]  }
   0x1 LB: > { %s437_s19 = sadd.s32 4294967295, %s479_s18   ;;  %p441_p0 = scmp.ge.s32.totalorder %s479_s18, 1  ;;  %s479_s18 = sphi %s515_s18, %s16_s18  }
   0x2   : > { %p189_p1 = scmp.lt.s32.totalorder %s479_s18, 3 }
   0x4   : > { %p190_p2 = pnand %p441_p0, %p189_p1 }
   0x5   : > { %p219_p3 = scmp.lt.s32.totalorder (!%p190_p2), %s437_s19, 1  ;;  %s483_s24 = smov (!%p190_p2), 127  }
   0x6   : > { %193 = sbr.rel (%p190_p2) target bundleno = 477 (0x1dd), region = 36  ;;  %s484_s25 = smov (!%p190_p2), 1  }
   0xb   : > { %v481_v0 = vmov 0.0   ;;  %s558_s19 = smov (!%p219_p3, %s437_s19), 1  ;;  %vm482_vm0 = vmmov 0   ;;  %vm238_vm1 = vcmask 121856   ;;  %v445_v2 = vld [vmem:[%s553_s2] ss:$0 sm:$0xff] }
   0xc   : > { %454 = vmatprep.subr.mxu0 %v481_v0  ;;  %458 = vmatprep.mubr.msk.f32.mxu0 %vm482_vm0, %v481_v0  ;;  %s523_s20 = sshll.u32 %s558_s19, 2  ;;  %vm261_vm2 = vcmask 1043456   ;;  %vm250_vm3 = vcmask 7168   ;;  %v446_v6 = vld [vmem:[%s552_s1] ss:$0 sm:$0xff]  ;;  %vm264_vm4 = vcmask 97280  }
   0xd   : > { %s222_s23 = scalar_lea.vmem %s551_s0, %s523_s20  ;;  %v263_v11 = vld [vmem:[%s554_s3] sm:$0xf]  ;;  %s226_s9 = scalar_lea.vmem %s555_s4, %s523_s20  ;;  %vm341_vm5 = vcmask 125952   ;;  %vm351_vm6 = vcmask 11264  }
   0xe   : > { %v233_v1 = vld [vmem:[%s222_s23] sm:$0xf]  ;;  %s230_s12 = scalar_lea.vmem %s556_s5, %s523_s20 }
   0xf   : > { %235 = vrot.lane.b32.xlu0 %v233_v1, %s483_s24  ;;  %v259_v7 = vrot.slane %v233_v1, 4 }
  0x13   : > { %247 = vrot.lane.b32.xlu0 %v233_v1, %s484_s25 }
  0x81   : > { %v236_v3 = vpop.permute.xlu0 %235 }
  0x82   : > { %v239_v4 = vsel %vm238_vm1, %v236_v3, 0.0 }
  0x83   : > { %v246_v5 = vmul.f32 %v445_v2, %v239_v4 }
  0x85   : > { %455 = vmatpush3.msk.msra.mxu0 %vm261_vm2, %v246_v5  ;;  %v248_v8 = vpop.permute.xlu0 %247 }
  0x86   : > { %v251_v9 = vsel %vm250_vm3, 0.0, %v248_v8  ;;  %456 = vmatprep.subr.mxu0 %v481_v0 }
  0x87   : > { %v258_v10 = vmul.f32 %v446_v6, %v251_v9 }
  0x89   : > { %v262_v12 = vsel %vm261_vm2, %v258_v10, %v259_v7 }
  0x8a   : > { %457 = vmatpush3.msra.mxu0 %v262_v12 }
  0x8b   : > { %459 = vmatmul.mubr.msk.f32.vlgmr.msra.gmra.mxu0 %vm264_vm4, %v263_v11 }
 0x14b   : > { %v337_v13 = vpop.f32.mrf.mxu0 }
 0x14c   : > { %v343_v14 = vsel %vm341_vm5, %v337_v13, 0.0  ;;  %342 = vst.msk [vmem:[%s226_s9] sm:$0xf] %vm341_vm5, %v337_v13  ;;  %v346_v15 = vmul.f32 %v337_v13, %v337_v13 }
 0x14d   : > { %344 = vadd.xlane.f32.xlu1 %v343_v14  ;;  %v460_v16 = vpop.f32.mrf.mxu0 }
 0x14e   : > { %v347_v17 = vsel %vm341_vm5, %v346_v15, 0.0 }
 0x151   : > { %348 = vadd.xlane.f32.xlu1 %v347_v17 }
 0x1d6   : > { %v345_v18 = vpop.xlane.xlu1 %344 }
 0x1da   : > { %v349_v19 = vpop.xlane.xlu1 %348 }
 0x1db   : > { %v350_v20 = vsel %vm250_vm3, %v345_v18, %v349_v19 }
 0x1dc   : > { %352 = vst.msk [vmem:[%s230_s12] sm:$0xf] %vm351_vm6, %v350_v20 }
 0x1dd PF: > { %s16_s18 = sadd.s32 1, %s479_s18  }
 0x1de   : > { %p13_p4 = scmp.ge.s32.totalorder %s16_s18, 4  }
 0x1e0   :  { %15 = sbr.rel (!%p13_p4) target bundleno = 1 (0x1), region = 78 }

// kernel: residual_forward.4
= control target key start
LH: loop header
LB: loop body
LE: loop exit
PB: predicated region body
PF: predicated region fallthrough
CT: control target
= control target key end

     0   :  { %s597_s24 = smov 0   ;;  %s639_s0 = inlined_call_operand.vmem [shape: f32[2,4,16], index: 0, kind: input, shape index: {}]   ;;  %s640_s1 = inlined_call_operand.vmem [shape: f32[4,1], index: 1, kind: input, shape index: {}]   ;;  %s641_s2 = inlined_call_operand.vmem [shape: f32[4,1], index: 2, kind: input, shape index: {}]   ;;  %s642_s3 = inlined_call_operand.vmem [shape: f32[1,16], index: 3, kind: input, shape index: {}]   ;;  %s643_s4 = inlined_call_operand.vmem [shape: f32[1,16], index: 4, kind: input, shape index: {}]   ;;  %s644_s5 = inlined_call_operand.vmem [shape: f32[4,12], index: 5, kind: input, shape index: {}]   ;;  %s645_s6 = inlined_call_operand.vmem [shape: f32[2,4,16], index: 6, kind: output, shape index: {0}]   ;;  %s646_s7 = inlined_call_operand.vmem [shape: f32[2,4,2], index: 7, kind: output, shape index: {1}]  }
   0x1 LB: > { %s506_s25 = sadd.s32 4294967295, %s550_s24   ;;  %p510_p0 = scmp.ge.s32.totalorder %s550_s24, 1  ;;  %s550_s24 = sphi %s597_s24, %s18_s24  }
   0x2   : > { %p239_p1 = scmp.lt.s32.totalorder %s550_s24, 3 }
   0x4   : > { %p240_p2 = pnand %p510_p0, %p239_p1 }
   0x5   : > { %p273_p3 = scmp.lt.s32.totalorder (!%p240_p2), %s506_s25, 1  ;;  %s555_s11 = smov (!%p240_p2), 127  }
   0x6   : > { %243 = sbr.rel (%p240_p2) target bundleno = 605 (0x25d), region = 44  ;;  %s556_s12 = smov (!%p240_p2), 1  }
   0xb   : > { %v288_v0 = vld [vmem:[%s640_s1] sm:$0xf]  ;;  %v552_v1 = vmov 0   ;;  %s648_s25 = smov (!%p273_p3, %s506_s25), 1  ;;  %v553_v3 = vmov 0.0   ;;  %vm554_vm0 = vmmov 0  }
   0xc   : > { %543 = vset.pattern.permute.xlu0 %v552_v1  ;;  %v295_v2 = vld [vmem:[%s641_s2] sm:$0xf]  ;;  %s611_s30 = sshll.u32 %s648_s25, 2  ;;  %523 = vmatprep.subr.mxu0 %v553_v3  ;;  %vm319_vm1 = vcmask 121856   ;;  %vm330_vm2 = vcmask 1043456   ;;  %vm307_vm3 = vcmask 7168  }
   0xd   : > { %291 = vperm.xlu0 %543, %v288_v0   ;;  %s276_s10 = scalar_lea.vmem %s639_s0, %s611_s30  ;;  %527 = vmatprep.mubr.msk.f32.mxu0 %vm554_vm0, %v553_v3  ;;  %v515_v10 = vld [vmem:[%s643_s4] ss:$0 sm:$0xff]  ;;  %vm333_vm4 = vcmask 97280   ;;  %s280_s21 = scalar_lea.vmem %s645_s6, %s611_s30  ;;  %vm410_vm5 = vcmask 125952   ;;  %vm420_vm6 = vcmask 11264  }
   0xe   : > { %v287_v5 = vld [vmem:[%s276_s10] sm:$0xf]  ;;  %s284_s25 = scalar_lea.vmem %s646_s7, %s611_s30 }
   0xf   : > { %v514_v14 = vld [vmem:[%s642_s3] ss:$0 sm:$0xff] }
  0x10   : > { %v332_v19 = vld [vmem:[%s644_s5] sm:$0xf] }
  0x11   : > { %298 = vperm.xlu0 %543, %v295_v2  }
  0x88   : > { %v292_v4 = vpop.permute.xlu0 %291 }
  0x89   : > { %v294_v6 = vmul.f32 %v292_v4, %v287_v5 }
  0x8c   : > { %v299_v7 = vpop.permute.xlu0 %298 }
  0x8d   : > { %v301_v8 = vadd.f32 %v299_v7, %v294_v6 }
  0x8f   : > { %v302_v9 = vmax.f32 %v301_v8, 0.0 }
  0x91   : > { %316 = vrot.lane.b32.xlu1 %v302_v9, %s555_s11  ;;  %v328_v17 = vrot.slane %v302_v9, 4 }
  0x95   : > { %304 = vrot.lane.b32.xlu1 %v302_v9, %s556_s12 }
 0x103   : > { %v317_v11 = vpop.permute.xlu1 %316 }
 0x104   : > { %v320_v12 = vsel %vm319_vm1, %v317_v11, 0.0 }
 0x105   : > { %v327_v13 = vmul.f32 %v515_v10, %v320_v12 }
 0x107   : > { %524 = vmatpush3.msk.msra.mxu0 %vm330_vm2, %v327_v13  ;;  %v305_v15 = vpop.permute.xlu1 %304 }
 0x108   : > { %v308_v16 = vsel %vm307_vm3, 0.0, %v305_v15  ;;  %525 = vmatprep.subr.mxu0 %v553_v3 }
 0x109   : > { %v315_v18 = vmul.f32 %v514_v14, %v308_v16 }
 0x10b   : > { %v331_v20 = vsel %vm330_vm2, %v315_v18, %v328_v17 }
 0x10c   : > { %526 = vmatpush3.msra.mxu0 %v331_v20 }
 0x10d   : > { %528 = vmatmul.mubr.msk.f32.vlgmr.msra.gmra.mxu0 %vm333_vm4, %v332_v19 }
 0x1cd   : > { %v406_v21 = vpop.f32.mrf.mxu0 }
 0x1ce   : > { %v412_v22 = vsel %vm410_vm5, %v406_v21, 0.0  ;;  %411 = vst.msk [vmem:[%s280_s21] sm:$0xf] %vm410_vm5, %v406_v21  ;;  %v415_v23 = vmul.f32 %v406_v21, %v406_v21 }
 0x1cf   : > { %413 = vadd.xlane.f32.xlu0 %v412_v22  ;;  %v529_v24 = vpop.f32.mrf.mxu0 }
 0x1d0   : > { %v416_v25 = vsel %vm410_vm5, %v415_v23, 0.0 }
 0x1d1   : > { %417 = vadd.xlane.f32.xlu1 %v416_v25 }
 0x258   : > { %v414_v26 = vpop.xlane.xlu0 %413 }
 0x25a   : > { %v418_v27 = vpop.xlane.xlu1 %417 }
 0x25b   : > { %v419_v28 = vsel %vm307_vm3, %v414_v26, %v418_v27 }
 0x25c   : > { %421 = vst.msk [vmem:[%s284_s25] sm:$0xf] %vm420_vm6, %v419_v28 }
 0x25d PF: > { %s18_s24 = sadd.s32 1, %s550_s24  }
 0x25e   : > { %p15_p4 = scmp.ge.s32.totalorder %s18_s24, 4  }
 0x260   :  { %17 = sbr.rel (!%p15_p4) target bundleno = 1 (0x1), region = 86 }

</bundles_post_ra>
